<compile_context>
chip_gen: v7x
topology: tpu7x:2x2x1
jax: 0.10.0
libtpu: 0.0.40
codegen_flags: <defaults>
</compile_context>

<pallas_src>
import math
import functools

import jax
import jax.numpy as jnp
from jax import lax
from jax.experimental import pallas as pl
from jax.experimental.pallas import tpu as pltpu


def _round_up(x: int, m: int) -> int:
    return ((x + m - 1) // m) * m


def _cdiv(a: int, b: int) -> int:
    return -(-a // b)


def _make_kernel(n_layers: int):
    """Fused FCNet body for a fixed number of hidden layers.

    Embedding / hidden weights arrive pre-transposed to (in, out) so every
    matmul is a plain (M,K)x(K,N) contraction (no per-step RHS transpose).
    The final hidden->1 layer is computed lane-dense:
      (1, hidden) x (TM, hidden)^T -> (1, TM), batch on the lane axis.
    """
    _LAST_LAST = (((1,), (1,)), ((), ()))   # contract last axis of both operands

    def kernel(*refs):
        # refs: [x, w_emb, b_emb, (w_i, b_i)*n_layers, w_fc, b_fc, enc_out, prob_out]
        x = refs[0][...]                        # (TM, in_features)
        w_emb = refs[1][...]                    # (in_features, emb)  pre-transposed
        b_emb = refs[2][...]                    # (1, emb)

        enc = jnp.dot(x, w_emb, preferred_element_type=jnp.float32) + b_emb

        # Hidden stack: Linear -> ReLU (Dropout is identity in eval mode).
        # TODO(synk): training-mode Dropout (p > 0) is not modeled.
        h = enc
        idx = 3
        for _ in range(n_layers):
            w = refs[idx][...]                  # (d_in, hidden)  pre-transposed
            b = refs[idx + 1][...]              # (1, hidden)
            idx += 2
            h = jnp.maximum(
                jnp.dot(h, w, preferred_element_type=jnp.float32) + b, 0.0)

        # Final fc (hidden -> 1), lane-dense: (1,hidden) x (TM,hidden)^T -> (1,TM).
        w_fc = refs[idx][...]                   # (1, hidden)  (PyTorch (out, in))
        b_fc = refs[idx + 1][...]               # (1, 1)
        logits = lax.dot_general(
            w_fc, h, _LAST_LAST, preferred_element_type=jnp.float32) + b_fc

        enc_out = refs[idx + 2]                 # (TM, emb)
        prob_out = refs[idx + 3]                # (1, TM)
        enc_out[...] = enc.astype(enc_out.dtype)
        prob_out[...] = jax.nn.sigmoid(logits).astype(prob_out.dtype)

    return kernel


def _choose_tile(B: int, tm: int) -> int:
    """Pick the batch tile.

    - B <= tm: one block with exact array extents (always (8,128)-legal).
    - B  > tm: multiple of 128 (lane axis of the prob block); shrink toward
      ~8 grid steps (>= 4 per v7x TensorCore under megacore) but never below
      512 rows so the ~0.35us/step fixed cost stays amortized.
    """
    tm = max(128, _round_up(tm, 128))
    if B <= tm:
        return B
    return min(tm, max(512, _round_up(_cdiv(B, 8), 128)))


def fcnet_linear_l1_forward(x, params, n_layers: int, tm: int = 1024):
    """Fused forward pass.

    params: dict with 'w_emb','b_emb', 'w_0','b_0',..., 'w_fc','b_fc' stored
    PyTorch-style (out, in) / (out,).  The wrapper transposes the embedding /
    hidden weights once (<20 KB total) so the kernel runs plain contractions.
    """
    B, in_features = x.shape
    emb = params["w_emb"].shape[0]

    tm = _choose_tile(B, tm)
    grid = (_cdiv(B, tm),)

    def resident(shape):
        # Full-extent block, constant index -> fetched once, VMEM-resident
        # across grid steps (no re-DMA).
        return pl.BlockSpec(shape, lambda i: (0, 0))

    # --- assemble inputs ----------------------------------------------------
    w_emb_t = params["w_emb"].T                     # (in_features, emb)
    kernel_inputs = [x, w_emb_t, params["b_emb"].reshape(1, -1)]
    in_specs = [
        pl.BlockSpec((tm, in_features), lambda i: (i, 0)),
        resident(w_emb_t.shape),
        resident((1, emb)),
    ]
    for i in range(n_layers):
        w_t = params[f"w_{i}"].T                    # (d_in, hidden)
        b = params[f"b_{i}"].reshape(1, -1)
        kernel_inputs += [w_t, b]
        in_specs += [resident(w_t.shape), resident(b.shape)]
    w_fc = params["w_fc"]                           # (1, hidden) kept (out, in)
    b_fc = params["b_fc"].reshape(1, 1)             # (1, 1)
    kernel_inputs += [w_fc, b_fc]
    in_specs += [resident(w_fc.shape), resident(b_fc.shape)]

    # --- VMEM budget from real block/param bytes (not a flat 32 MiB) --------
    param_bytes = sum(int(a.size) * a.dtype.itemsize for a in kernel_inputs[1:])
    block_bytes = tm * (in_features + emb + 1) * x.dtype.itemsize
    vmem_limit = int(max(4 * 1024 * 1024,
                         4 * block_bytes + 2 * param_bytes + (1 << 20)))

    enc, prob = pl.pallas_call(
        _make_kernel(n_layers),
        out_shape=(
            jax.ShapeDtypeStruct((B, emb), jnp.float32),
            jax.ShapeDtypeStruct((1, B), jnp.float32),   # lane-dense prob row
        ),
        grid=grid,
        in_specs=in_specs,
        out_specs=(
            pl.BlockSpec((tm, emb), lambda i: (i, 0)),
            pl.BlockSpec((1, tm), lambda i: (0, i)),
        ),
        compiler_params=pltpu.CompilerParams(
            dimension_semantics=("parallel",),           # megacore sharding
            vmem_limit_bytes=vmem_limit,
        ),
    )(*kernel_inputs)

    # prob is (1, B) -> (B,), matching .squeeze(); no padding to strip.
    return enc, prob[0]


def init_params(key, in_features, hidden_size, n_layers, embedding_dim):
    """Deterministic PyTorch-Linear-style init (uniform(-1/sqrt(fan_in), ...))."""
    emb = embedding_dim * 4
    params = {}

    def linear(key, fan_in, fan_out):
        kw, kb = jax.random.split(key)
        bound = 1.0 / math.sqrt(fan_in)
        w = jax.random.uniform(kw, (fan_out, fan_in), jnp.float32, -bound, bound)
        b = jax.random.uniform(kb, (fan_out,), jnp.float32, -bound, bound)
        return w, b

    keys = jax.random.split(key, n_layers + 2)
    params["w_emb"], params["b_emb"] = linear(keys[0], in_features, emb)
    d_in = emb
    for i in range(n_layers):
        params[f"w_{i}"], params[f"b_{i}"] = linear(keys[1 + i], d_in, hidden_size)
        d_in = hidden_size
    params["w_fc"], params["b_fc"] = linear(keys[-1], hidden_size, 1)
    return params


def reference_forward(x, params, n_layers):
    """Pure-JAX reference mirroring the PyTorch module (eval mode)."""
    enc = x @ params["w_emb"].T + params["b_emb"]
    h = enc
    for i in range(n_layers):
        h = jnp.maximum(h @ params[f"w_{i}"].T + params[f"b_{i}"], 0.0)
    prob = jax.nn.sigmoid(h @ params["w_fc"].T + params["b_fc"])
    return enc, jnp.squeeze(prob, axis=-1)


if __name__ == "__main__":
    in_features = 16
    hidden_size = 32
    n_layers = 2
    embedding_dim = 16          # module uses embedding_dim * 4 = 64 internally

    key = jax.random.PRNGKey(0)
    kx, kp = jax.random.split(key)
    params = init_params(kp, in_features, hidden_size, n_layers, embedding_dim)

    fwd = jax.jit(functools.partial(fcnet_linear_l1_forward, n_layers=n_layers))

    # Case 1: typical batch -> single 256-row block (exact extents, no pad).
    batch = 256
    x = jax.random.normal(kx, (batch, in_features), jnp.float32)
    enc, prob = fwd(x, params)
    jax.block_until_ready((enc, prob))
    enc_ref, prob_ref = reference_forward(x, params, n_layers)
    assert enc.shape == (batch, embedding_dim * 4)
    assert prob.shape == (batch,)
    assert jnp.allclose(enc, enc_ref, atol=1e-5, rtol=1e-5)
    assert jnp.allclose(prob, prob_ref, atol=1e-5, rtol=1e-5)

    # Case 2: small batch (block shape == full array extents).
    batch_s = 8
    xs = jax.random.normal(jax.random.PRNGKey(1), (batch_s, in_features), jnp.float32)
    enc_s, prob_s = fwd(xs, params)
    jax.block_until_ready((enc_s, prob_s))
    enc_sr, prob_sr = reference_forward(xs, params, n_layers)
    assert enc_s.shape == (batch_s, embedding_dim * 4)
    assert prob_s.shape == (batch_s,)
    assert jnp.allclose(enc_s, enc_sr, atol=1e-5, rtol=1e-5)
    assert jnp.allclose(prob_s, prob_sr, atol=1e-5, rtol=1e-5)

    # Case 3: multi-block batch grid with a ragged (masked) edge block, no pad.
    fwd_small_tile = jax.jit(
        functools.partial(fcnet_linear_l1_forward, n_layers=n_layers, tm=128))
    batch_r = 300               # grid = (3,), last block only rows 256..299 valid
    xr = jax.random.normal(jax.random.PRNGKey(2), (batch_r, in_features), jnp.float32)
    enc_r, prob_r = fwd_small_tile(xr, params)
    jax.block_until_ready((enc_r, prob_r))
    enc_rr, prob_rr = reference_forward(xr, params, n_layers)
    assert enc_r.shape == (batch_r, embedding_dim * 4)
    assert prob_r.shape == (batch_r,)
    assert jnp.allclose(enc_r, enc_rr, atol=1e-5, rtol=1e-5)
    assert jnp.allclose(prob_r, prob_rr, atol=1e-5, rtol=1e-5)

    print("KERNEL_OK")
</pallas_src>

<mosaic_0001>
module attributes {stable_mosaic.version = 11 : i64} {
  func.func @kernel(%arg0: i32, %arg1: memref<256x16xf32, #tpu.memory_space<vmem>>, %arg2: memref<16x64xf32, #tpu.memory_space<vmem>>, %arg3: memref<1x64xf32, #tpu.memory_space<vmem>>, %arg4: memref<64x32xf32, #tpu.memory_space<vmem>>, %arg5: memref<1x32xf32, #tpu.memory_space<vmem>>, %arg6: memref<32x32xf32, #tpu.memory_space<vmem>>, %arg7: memref<1x32xf32, #tpu.memory_space<vmem>>, %arg8: memref<1x32xf32, #tpu.memory_space<vmem>>, %arg9: memref<1x1xf32, #tpu.memory_space<vmem>>, %arg10: memref<256x64xf32, #tpu.memory_space<vmem>>, %arg11: memref<1x256xf32, #tpu.memory_space<vmem>>) attributes {dimension_semantics = [#tpu.dimension_semantics<parallel>], iteration_bounds = array<i64: 1>, scalar_prefetch = 0 : i64, scratch_operands = 0 : i64, tpu.core_type = #tpu.core_type<tc>, window_params = [{transform_indices = @transform_0, window_bounds = array<i64: 256, 16>}, {pipeline_mode = #tpu.pipeline_mode<synchronous>, transform_indices = @transform_1, window_bounds = array<i64: 16, 64>}, {pipeline_mode = #tpu.pipeline_mode<synchronous>, transform_indices = @transform_2, window_bounds = array<i64: 1, 64>}, {pipeline_mode = #tpu.pipeline_mode<synchronous>, transform_indices = @transform_3, window_bounds = array<i64: 64, 32>}, {pipeline_mode = #tpu.pipeline_mode<synchronous>, transform_indices = @transform_4, window_bounds = array<i64: 1, 32>}, {pipeline_mode = #tpu.pipeline_mode<synchronous>, transform_indices = @transform_5, window_bounds = array<i64: 32, 32>}, {pipeline_mode = #tpu.pipeline_mode<synchronous>, transform_indices = @transform_6, window_bounds = array<i64: 1, 32>}, {pipeline_mode = #tpu.pipeline_mode<synchronous>, transform_indices = @transform_7, window_bounds = array<i64: 1, 32>}, {pipeline_mode = #tpu.pipeline_mode<synchronous>, transform_indices = @transform_8, window_bounds = array<i64: 1, 1>}, {transform_indices = @transform_9, window_bounds = array<i64: 256, 64>}, {transform_indices = @transform_10, window_bounds = array<i64: 1, 256>}]} {
    %c0 = arith.constant 0 : index
    %c0_0 = arith.constant 0 : index
    %0 = vector.load %arg1[%c0, %c0_0] : memref<256x16xf32, #tpu.memory_space<vmem>>, vector<256x16xf32>
    %c0_1 = arith.constant 0 : index
    %c0_2 = arith.constant 0 : index
    %1 = vector.load %arg2[%c0_1, %c0_2] : memref<16x64xf32, #tpu.memory_space<vmem>>, vector<16x64xf32>
    %c0_3 = arith.constant 0 : index
    %c0_4 = arith.constant 0 : index
    %2 = vector.load %arg3[%c0_3, %c0_4] : memref<1x64xf32, #tpu.memory_space<vmem>>, vector<1x64xf32>
    %cst = arith.constant dense<0.000000e+00> : vector<256x64xf32>
    %3 = tpu.matmul %0, %1, %cst {dimension_numbers = #tpu.dot_dimension_numbers<[1], [0], [0], [1], [0, 0, 1, 1], [], []>} : vector<256x16xf32>, vector<16x64xf32>, vector<256x64xf32> -> vector<256x64xf32>
    %4 = vector.broadcast %2 : vector<1x64xf32> to vector<256x64xf32>
    %5 = arith.addf %3, %4 : vector<256x64xf32>
    %c0_5 = arith.constant 0 : index
    %c0_6 = arith.constant 0 : index
    %6 = vector.load %arg4[%c0_5, %c0_6] : memref<64x32xf32, #tpu.memory_space<vmem>>, vector<64x32xf32>
    %c0_7 = arith.constant 0 : index
    %c0_8 = arith.constant 0 : index
    %7 = vector.load %arg5[%c0_7, %c0_8] : memref<1x32xf32, #tpu.memory_space<vmem>>, vector<1x32xf32>
    %cst_9 = arith.constant dense<0.000000e+00> : vector<256x32xf32>
    %8 = tpu.matmul %5, %6, %cst_9 {dimension_numbers = #tpu.dot_dimension_numbers<[1], [0], [0], [1], [0, 0, 1, 1], [], []>} : vector<256x64xf32>, vector<64x32xf32>, vector<256x32xf32> -> vector<256x32xf32>
    %9 = vector.broadcast %7 : vector<1x32xf32> to vector<256x32xf32>
    %10 = arith.addf %8, %9 : vector<256x32xf32>
    %cst_10 = arith.constant 0.000000e+00 : f32
    %11 = vector.broadcast %cst_10 : f32 to vector<256x32xf32>
    %12 = arith.maximumf %10, %11 : vector<256x32xf32>
    %c0_11 = arith.constant 0 : index
    %c0_12 = arith.constant 0 : index
    %13 = vector.load %arg6[%c0_11, %c0_12] : memref<32x32xf32, #tpu.memory_space<vmem>>, vector<32x32xf32>
    %c0_13 = arith.constant 0 : index
    %c0_14 = arith.constant 0 : index
    %14 = vector.load %arg7[%c0_13, %c0_14] : memref<1x32xf32, #tpu.memory_space<vmem>>, vector<1x32xf32>
    %cst_15 = arith.constant dense<0.000000e+00> : vector<256x32xf32>
    %15 = tpu.matmul %12, %13, %cst_15 {dimension_numbers = #tpu.dot_dimension_numbers<[1], [0], [0], [1], [0, 0, 1, 1], [], []>} : vector<256x32xf32>, vector<32x32xf32>, vector<256x32xf32> -> vector<256x32xf32>
    %16 = vector.broadcast %14 : vector<1x32xf32> to vector<256x32xf32>
    %17 = arith.addf %15, %16 : vector<256x32xf32>
    %cst_16 = arith.constant 0.000000e+00 : f32
    %18 = vector.broadcast %cst_16 : f32 to vector<256x32xf32>
    %19 = arith.maximumf %17, %18 : vector<256x32xf32>
    %c0_17 = arith.constant 0 : index
    %c0_18 = arith.constant 0 : index
    %20 = vector.load %arg8[%c0_17, %c0_18] : memref<1x32xf32, #tpu.memory_space<vmem>>, vector<1x32xf32>
    %c0_19 = arith.constant 0 : index
    %c0_20 = arith.constant 0 : index
    %21 = vector.load %arg9[%c0_19, %c0_20] : memref<1x1xf32, #tpu.memory_space<vmem>>, vector<1x1xf32>
    %cst_21 = arith.constant dense<0.000000e+00> : vector<1x256xf32>
    %22 = tpu.matmul %20, %19, %cst_21 {dimension_numbers = #tpu.dot_dimension_numbers<[1], [1], [0], [0], [0, 0, 1, 0], [], []>} : vector<1x32xf32>, vector<256x32xf32>, vector<1x256xf32> -> vector<1x256xf32>
    %23 = vector.broadcast %21 : vector<1x1xf32> to vector<1x256xf32>
    %24 = arith.addf %22, %23 : vector<1x256xf32>
    %c0_22 = arith.constant 0 : index
    %c0_23 = arith.constant 0 : index
    %25 = vector.load %arg10[%c0_22, %c0_23] : memref<256x64xf32, #tpu.memory_space<vmem>>, vector<256x64xf32>
    tpu.vector_store %arg10[%c0_22, %c0_23], %5 {strides = array<i32>} : memref<256x64xf32, #tpu.memory_space<vmem>>, vector<256x64xf32>,
    %26 = arith.negf %24 : vector<1x256xf32>
    %27 = math.exp %26 : vector<1x256xf32>
    %cst_24 = arith.constant 1.000000e+00 : f32
    %28 = vector.broadcast %cst_24 : f32 to vector<1x256xf32>
    %29 = arith.addf %28, %27 : vector<1x256xf32>
    %30 = arith.divf %28, %29 : vector<1x256xf32>
    %c0_25 = arith.constant 0 : index
    %c0_26 = arith.constant 0 : index
    %31 = vector.load %arg11[%c0_25, %c0_26] : memref<1x256xf32, #tpu.memory_space<vmem>>, vector<1x256xf32>
    tpu.vector_store %arg11[%c0_25, %c0_26], %30 {strides = array<i32>} : memref<1x256xf32, #tpu.memory_space<vmem>>, vector<1x256xf32>,
    return
  }
  func.func @transform_0(%arg0: i32) -> (i32, i32) {
    %c0_i32 = arith.constant 0 : i32
    %c0_i32_0 = arith.constant 0 : i32
    return %arg0, %c0_i32 : i32, i32
  }
  func.func @transform_1(%arg0: i32) -> (i32, i32) {
    %c0_i32 = arith.constant 0 : i32
    %c0_i32_0 = arith.constant 0 : i32
    %c0_i32_1 = arith.constant 0 : i32
    return %c0_i32, %c0_i32_0 : i32, i32
  }
  func.func @transform_2(%arg0: i32) -> (i32, i32) {
    %c0_i32 = arith.constant 0 : i32
    %c0_i32_0 = arith.constant 0 : i32
    %c0_i32_1 = arith.constant 0 : i32
    return %c0_i32, %c0_i32_0 : i32, i32
  }
  func.func @transform_3(%arg0: i32) -> (i32, i32) {
    %c0_i32 = arith.constant 0 : i32
    %c0_i32_0 = arith.constant 0 : i32
    %c0_i32_1 = arith.constant 0 : i32
    return %c0_i32, %c0_i32_0 : i32, i32
  }
  func.func @transform_4(%arg0: i32) -> (i32, i32) {
    %c0_i32 = arith.constant 0 : i32
    %c0_i32_0 = arith.constant 0 : i32
    %c0_i32_1 = arith.constant 0 : i32
    return %c0_i32, %c0_i32_0 : i32, i32
  }
  func.func @transform_5(%arg0: i32) -> (i32, i32) {
    %c0_i32 = arith.constant 0 : i32
    %c0_i32_0 = arith.constant 0 : i32
    %c0_i32_1 = arith.constant 0 : i32
    return %c0_i32, %c0_i32_0 : i32, i32
  }
  func.func @transform_6(%arg0: i32) -> (i32, i32) {
    %c0_i32 = arith.constant 0 : i32
    %c0_i32_0 = arith.constant 0 : i32
    %c0_i32_1 = arith.constant 0 : i32
    return %c0_i32, %c0_i32_0 : i32, i32
  }
  func.func @transform_7(%arg0: i32) -> (i32, i32) {
    %c0_i32 = arith.constant 0 : i32
    %c0_i32_0 = arith.constant 0 : i32
    %c0_i32_1 = arith.constant 0 : i32
    return %c0_i32, %c0_i32_0 : i32, i32
  }
  func.func @transform_8(%arg0: i32) -> (i32, i32) {
    %c0_i32 = arith.constant 0 : i32
    %c0_i32_0 = arith.constant 0 : i32
    %c0_i32_1 = arith.constant 0 : i32
    return %c0_i32, %c0_i32_0 : i32, i32
  }
  func.func @transform_9(%arg0: i32) -> (i32, i32) {
    %c0_i32 = arith.constant 0 : i32
    %c0_i32_0 = arith.constant 0 : i32
    return %arg0, %c0_i32 : i32, i32
  }
  func.func @transform_10(%arg0: i32) -> (i32, i32) {
    %c0_i32 = arith.constant 0 : i32
    %c0_i32_0 = arith.constant 0 : i32
    return %c0_i32, %arg0 : i32, i32
  }
}

</mosaic_0001>

<bundles_post_ra>
// kernel: fcnet_linear_l1_forward.1
= control target key start
LH: loop header
LB: loop body
LE: loop exit
PB: predicated region body
PF: predicated region fallthrough
CT: control target
= control target key end

     0   :  { %s2613_s0 = inlined_call_operand.vmem [shape: f32[256,16], index: 0, kind: input, shape index: {}]   ;;  %s2614_s1 = inlined_call_operand.vmem [shape: f32[16,64], index: 1, kind: input, shape index: {}]   ;;  %s2615_s2 = inlined_call_operand.vmem [shape: f32[1,64], index: 2, kind: input, shape index: {}]   ;;  %s2616_s3 = inlined_call_operand.vmem [shape: f32[64,32], index: 3, kind: input, shape index: {}]   ;;  %s2617_s4 = inlined_call_operand.vmem [shape: f32[1,32], index: 4, kind: input, shape index: {}]   ;;  %s2618_s5 = inlined_call_operand.vmem [shape: f32[32,32], index: 5, kind: input, shape index: {}]   ;;  %s2619_s6 = inlined_call_operand.vmem [shape: f32[1,32], index: 6, kind: input, shape index: {}]   ;;  %s2620_s7 = inlined_call_operand.vmem [shape: f32[1,32], index: 7, kind: input, shape index: {}]   ;;  %s2621_s8 = inlined_call_operand.<no memory space> [shape: f32[1,1], index: 8, kind: input, shape index: {}]   ;;  %s2622_s9 = inlined_call_operand.vmem [shape: f32[256,64], index: 9, kind: output, shape index: {0}]   ;;  %s2623_s10 = inlined_call_operand.hbm [shape: f32[1,256], index: 10, kind: output, shape index: {1}]  }
   0x1   :  { %v16_v0 = vstv %s2621_s8 }
   0x2   :  { %17 = vst [vmem:[#allocation2] sm:$0x1] %v16_v0 }
   0x3   :  { %v69_v1 = vld [vmem:[%s2614_s1] sm:$0xff]  ;;  %v70_v2 = vld [vmem:[%s2614_s1 + $0x8] sm:$0xff]  ;;  %vm78_vm0 = vcmask 130048   ;;  %v39_v6 = vld [vmem:[%s2613_s0 + $0x10] sm:$0xff] }
   0x4   :  { %v37_v3 = vld [vmem:[%s2613_s0] sm:$0xff]  ;;  %v1850_v4 = vpack.c.bf16 %v70_v2, %v69_v1  ;;  %v38_v5 = vld [vmem:[%s2613_s0 + $0x8] sm:$0xff]  ;;  %v55_v7 = vld [vmem:[%s2613_s0 + $0x90] sm:$0xff] }
   0x5   :  { %1682 = vmatprep.mubr.msk.f32.mxu0 %vm78_vm0, %v37_v3  ;;  %1709 = vmatprep.mubr.msk.f32.mxu1 %vm78_vm0, %v55_v7  ;;  %v56_v8 = vld [vmem:[%s2613_s0 + $0x98] sm:$0xff]  ;;  %v57_v9 = vld [vmem:[%s2613_s0 + $0xa0] sm:$0xff]  ;;  %v58_v12 = vld [vmem:[%s2613_s0 + $0xa8] sm:$0xff] }
   0x6   :  { %1851 = vmatprep.subr.bf16.mxu0 %v1850_v4  ;;  %1926 = vmatprep.subr.bf16.mxu1 %v1850_v4  ;;  %v40_v10 = vld [vmem:[%s2613_s0 + $0x18] sm:$0xff]  ;;  %v41_v11 = vld [vmem:[%s2613_s0 + $0x20] sm:$0xff]  ;;  %v59_v13 = vld [vmem:[%s2613_s0 + $0xb0] sm:$0xff] }
   0x7   :  { %1853 = vmatpush3.bf16.msra.mxu0 %v1850_v4  ;;  %1927 = vmatpush3.bf16.msra.mxu1 %v1850_v4  ;;  %v400_v14 = vld [vmem:[%s2616_s3] sm:$0xff]  ;;  %v401_v15 = vld [vmem:[%s2616_s3 + $0x8] sm:$0xff]  ;;  %v402_v18 = vld [vmem:[%s2616_s3 + $0x10] sm:$0xff] }
   0x8   :  { %v42_v16 = vld [vmem:[%s2613_s0 + $0x28] sm:$0xff]  ;;  %v1854_v17 = vpack.c.bf16 %v401_v15, %v400_v14  ;;  %v403_v19 = vld [vmem:[%s2616_s3 + $0x18] sm:$0xff]  ;;  %v43_v20 = vld [vmem:[%s2613_s0 + $0x30] sm:$0xff] }
   0x9   :  { %v60_v21 = vld [vmem:[%s2613_s0 + $0xb8] sm:$0xff]  ;;  %v61_v22 = vld [vmem:[%s2613_s0 + $0xc0] sm:$0xff]  ;;  %v1858_v23 = vpack.c.bf16 %v403_v19, %v402_v18  ;;  %v405_v25 = vld [vmem:[%s2616_s3 + $0x28] sm:$0xff] }
   0xa   :  { %1683 = vmatmul.mubr.msk.f32.vlgmr.msra.gmra.mrb[0].mxu0 %vm78_vm0, %v38_v5  ;;  %1710 = vmatmul.mubr.msk.f32.vlgmr.msra.gmra.mrb[0].mxu1 %vm78_vm0, %v56_v8  ;;  %v404_v24 = vld [vmem:[%s2616_s3 + $0x20] sm:$0xff] }
   0xb   :  { %1685 = vmatprep.mubr.msk.f32.mxu0 %vm78_vm0, %v39_v6  ;;  %1712 = vmatprep.mubr.msk.f32.mxu1 %vm78_vm0, %v57_v9 }
   0xc   :  { %1855 = vmatprep.subr.bf16.mxu1 %v1854_v17 }
   0xe   :  { %1686 = vmatmul.mubr.msk.f32.gmra.mrb[2].mxu0 %vm78_vm0, %v40_v10  ;;  %1713 = vmatmul.mubr.msk.f32.gmra.mrb[2].mxu1 %vm78_vm0, %v58_v12 }
   0xf   :  { %1688 = vmatprep.mubr.msk.f32.mxu0 %vm78_vm0, %v41_v11  ;;  %1715 = vmatprep.mubr.msk.f32.mxu1 %vm78_vm0, %v59_v13 }
  0x10   :  { %18 = vsyncpa [#allocation4], 0  ;;  %1857 = vmatpush3.bf16.msra.mxu1 %v1854_v17  ;;  %v44_v26 = vld [vmem:[%s2613_s0 + $0x38] sm:$0xff]  ;;  %v45_v27 = vld [vmem:[%s2613_s0 + $0x40] sm:$0xff]  ;;  %v1862_v29 = vpack.c.bf16 %v405_v25, %v404_v24  ;;  %vm415_vm1 = vcmask 523264   ;;  %vm780_vm2 = vcmask 261120  }
  0x11   :  { %v62_v28 = vld [vmem:[%s2613_s0 + $0xc8] sm:$0xff]  ;;  %1859 = vmatprep.subr.bf16.mxu1 %v1858_v23  ;;  %v63_v30 = vld [vmem:[%s2613_s0 + $0xd0] sm:$0xff]  ;;  %v407_v32 = vld [vmem:[%s2616_s3 + $0x38] sm:$0xff] }
  0x12   :  { %1689 = vmatmul.mubr.msk.f32.gmra.mrb[4].mxu0 %vm78_vm0, %v42_v16  ;;  %1716 = vmatmul.mubr.msk.f32.gmra.mrb[4].mxu1 %vm78_vm0, %v60_v21  ;;  %v406_v31 = vld [vmem:[%s2616_s3 + $0x30] sm:$0xff]  ;;  %v46_v33 = vld [vmem:[%s2613_s0 + $0x48] sm:$0xff]  ;;  %v64_v35 = vld [vmem:[%s2613_s0 + $0xd8] sm:$0xff] }
  0x13   :  { %1691 = vmatprep.mubr.msk.f32.mxu0 %vm78_vm0, %v43_v20  ;;  %1718 = vmatprep.mubr.msk.f32.mxu1 %vm78_vm0, %v61_v22  ;;  %v47_v34 = vld [vmem:[%s2613_s0 + $0x50] sm:$0xff]  ;;  %v1866_v36 = vpack.c.bf16 %v407_v32, %v406_v31  ;;  %v65_v37 = vld [vmem:[%s2613_s0 + $0xe0] sm:$0xff]  ;;  %v48_v38 = vld [vmem:[%s2613_s0 + $0x58] sm:$0xff] }
  0x14   :  { %1861 = vmatpush3.bf16.msra.mxu1 %v1858_v23  ;;  %v49_v39 = vld [vmem:[%s2613_s0 + $0x60] sm:$0xff]  ;;  %v66_v40 = vld [vmem:[%s2613_s0 + $0xe8] sm:$0xff]  ;;  %v67_v41 = vld [vmem:[%s2613_s0 + $0xf0] sm:$0xff] }
  0x15   :  { %1863 = vmatprep.subr.bf16.mxu1 %v1862_v29  ;;  %v50_v42 = vld [vmem:[%s2613_s0 + $0x68] sm:$0xff]  ;;  %v51_v43 = vld [vmem:[%s2613_s0 + $0x70] sm:$0xff]  ;;  %v68_v44 = vld [vmem:[%s2613_s0 + $0xf8] sm:$0xff] }
  0x16   :  { %1692 = vmatmul.mubr.msk.f32.gmra.mrb[6].mxu0 %vm78_vm0, %v44_v26  ;;  %1719 = vmatmul.mubr.msk.f32.gmra.mrb[6].mxu1 %vm78_vm0, %v62_v28  ;;  %v52_v45 = vld [vmem:[%s2613_s0 + $0x78] sm:$0xff]  ;;  %v53_v46 = vld [vmem:[%s2613_s0 + $0x80] sm:$0xff]  ;;  %v54_v47 = vld [vmem:[%s2613_s0 + $0x88] sm:$0xff] }
  0x17   :  { %1694 = vmatprep.mubr.msk.f32.mxu0 %vm78_vm0, %v45_v27  ;;  %1721 = vmatprep.mubr.msk.f32.mxu1 %vm78_vm0, %v63_v30  ;;  %v769_v48 = vld [vmem:[%s2618_s5] sm:$0xff]  ;;  %v770_v49 = vld [vmem:[%s2618_s5 + $0x8] sm:$0xff]  ;;  %v771_v50 = vld [vmem:[%s2618_s5 + $0x10] sm:$0xff] }
  0x18   :  { %1865 = vmatpush3.bf16.msra.mxu1 %v1862_v29  ;;  %v1870_v51 = vpack.c.bf16 %v770_v49, %v769_v48  ;;  %v772_v52 = vld [vmem:[%s2618_s5 + $0x18] sm:$0xff]  ;;  %v2198_v54 = vld [vmem:[%s2615_s2] ss:$0 sm:$0xff]  ;;  %vm2542_vm3 = vmpackc.low %vm780_vm2, %vm780_vm2 }
  0x19   :  { %1867 = vmatprep.subr.bf16.mxu1 %v1866_v36  ;;  %v1874_v53 = vpack.c.bf16 %v772_v52, %v771_v50 }
  0x1a   :  { %1695 = vmatmul.mubr.msk.f32.gmra.mrb[8].mxu0 %vm78_vm0, %v46_v33  ;;  %1722 = vmatmul.mubr.msk.f32.gmra.mrb[8].mxu1 %vm78_vm0, %v64_v35 }
  0x1b   :  { %1697 = vmatprep.mubr.msk.f32.mxu0 %vm78_vm0, %v47_v34  ;;  %1724 = vmatprep.mubr.msk.f32.mxu1 %vm78_vm0, %v65_v37 }
  0x1c   :  { %1869 = vmatpush3.bf16.msra.mxu1 %v1866_v36  ;;  %1871 = vmatprep.subr.bf16.mxu0 %v1870_v51 }
  0x1d   :  { %1873 = vmatpush3.bf16.msra.mxu0 %v1870_v51 }
  0x1e   :  { %1698 = vmatmul.mubr.msk.f32.gmra.mrb[10].mxu0 %vm78_vm0, %v48_v38  ;;  %1725 = vmatmul.mubr.msk.f32.gmra.mrb[10].mxu1 %vm78_vm0, %v66_v40 }
  0x1f   :  { %1700 = vmatprep.mubr.msk.f32.mxu0 %vm78_vm0, %v49_v39  ;;  %1727 = vmatprep.mubr.msk.f32.mxu1 %vm78_vm0, %v67_v41 }
  0x20   :  { %1875 = vmatprep.subr.bf16.mxu0 %v1874_v53 }
  0x21   :  { %1877 = vmatpush3.bf16.msra.mxu0 %v1874_v53 }
  0x22   :  { %1701 = vmatmul.mubr.msk.f32.gmra.mrb[12].mxu0 %vm78_vm0, %v50_v42  ;;  %1728 = vmatmul.mubr.msk.f32.gmra.mrb[12].mxu1 %vm78_vm0, %v68_v44 }
  0x23   :  { %1703 = vmatprep.mubr.msk.f32.mxu0 %vm78_vm0, %v51_v43 }
  0x26   :  { %1704 = vmatmul.mubr.msk.f32.gmra.mrb[14].mxu0 %vm78_vm0, %v52_v45 }
  0x27   :  { %1706 = vmatprep.mubr.msk.f32.mxu0 %vm78_vm0, %v53_v46 }
  0x2a   :  { %1707 = vmatmul.mubr.msk.f32.gmra.mrb[16].mxu0 %vm78_vm0, %v54_v47 }
  0xdd   :  { %v1684_v55 = vpop.f32.mrb[0].mxu0  ;;  %v1711_v58 = vpop.f32.mrb[0].mxu1 }
  0xde   :  { %v247_v56 = vadd.f32 %v1684_v55, %v2198_v54  ;;  %v241_v57 = vpop.f32.mrb[1].mxu0  ;;  %v2203_v60 = vadd.f32 %v1711_v58, %v2198_v54  ;;  %v331_v61 = vpop.f32.mrb[1].mxu1 }
  0xdf   :  { %v242_v59 = vadd.f32 %v2198_v54, %v241_v57  ;;  %v2210_v62 = vadd.f32 %v2198_v54, %v331_v61 }
  0xe0   :  { %1316 = vst.msk [vmem:[%s2622_s9 + $0x8] sm:$0xff] %vm415_vm1, %v247_v56  ;;  %1334 = vst.msk [vmem:[%s2622_s9 + $0x98] sm:$0xff] %vm415_vm1, %v2203_v60 }
  0xe1   :  { %1315 = vst.msk [vmem:[%s2622_s9] sm:$0xff] %vm415_vm1, %v242_v59  ;;  %v1687_v63 = vpop.f32.mrb[2].mxu0  ;;  %1746 = vmatprep.mubr.msk.f32.mxu1 %vm415_vm1, %v242_v59  ;;  %1333 = vst.msk [vmem:[%s2622_s9 + $0x90] sm:$0xff] %vm415_vm1, %v2210_v62  ;;  %v1714_v2 = vpop.f32.mrb[2].mxu1 }
  0xe2   :  { %v257_v0 = vadd.f32 %v1687_v63, %v2198_v54  ;;  %v251_v1 = vpop.f32.mrb[3].mxu0  ;;  %1747 = vmatmul.mubr.msk.f32.vlgmr.msra.gmra.mrb[14].mxu1 %vm415_vm1, %v247_v56  ;;  %v2231_v4 = vadd.f32 %v1714_v2, %v2198_v54  ;;  %v341_v5 = vpop.f32.mrb[3].mxu1 }
  0xe3   :  { %v252_v3 = vadd.f32 %v2198_v54, %v251_v1  ;;  %v2238_v6 = vadd.f32 %v2198_v54, %v341_v5 }
  0xe4   :  { %1318 = vst.msk [vmem:[%s2622_s9 + $0x18] sm:$0xff] %vm415_vm1, %v257_v0  ;;  %1336 = vst.msk [vmem:[%s2622_s9 + $0xa8] sm:$0xff] %vm415_vm1, %v2231_v4 }
  0xe5   :  { %1317 = vst.msk [vmem:[%s2622_s9 + $0x10] sm:$0xff] %vm415_vm1, %v252_v3  ;;  %v1690_v7 = vpop.f32.mrb[4].mxu0  ;;  %1749 = vmatprep.mubr.msk.f32.mxu1 %vm415_vm1, %v252_v3  ;;  %1335 = vst.msk [vmem:[%s2622_s9 + $0xa0] sm:$0xff] %vm415_vm1, %v2238_v6  ;;  %v1717_v10 = vpop.f32.mrb[4].mxu1 }
  0xe6   :  { %v267_v8 = vadd.f32 %v1690_v7, %v2198_v54  ;;  %v261_v9 = vpop.f32.mrb[5].mxu0  ;;  %1750 = vmatmul.mubr.msk.f32.gmra.mrb[16].mxu1 %vm415_vm1, %v257_v0  ;;  %v2259_v12 = vadd.f32 %v1717_v10, %v2198_v54  ;;  %v351_v13 = vpop.f32.mrb[5].mxu1 }
  0xe7   :  { %v262_v11 = vadd.f32 %v2198_v54, %v261_v9  ;;  %v2266_v14 = vadd.f32 %v2198_v54, %v351_v13 }
  0xe8   :  { %1320 = vst.msk [vmem:[%s2622_s9 + $0x28] sm:$0xff] %vm415_vm1, %v267_v8  ;;  %1338 = vst.msk [vmem:[%s2622_s9 + $0xb8] sm:$0xff] %vm415_vm1, %v2259_v12 }
  0xe9   :  { %1319 = vst.msk [vmem:[%s2622_s9 + $0x20] sm:$0xff] %vm415_vm1, %v262_v11  ;;  %v1693_v15 = vpop.f32.mrb[6].mxu0  ;;  %1752 = vmatprep.mubr.msk.f32.mxu1 %vm415_vm1, %v262_v11  ;;  %1337 = vst.msk [vmem:[%s2622_s9 + $0xb0] sm:$0xff] %vm415_vm1, %v2266_v14  ;;  %v1720_v18 = vpop.f32.mrb[6].mxu1 }
  0xea   :  { %v277_v16 = vadd.f32 %v1693_v15, %v2198_v54  ;;  %v271_v17 = vpop.f32.mrb[7].mxu0  ;;  %1753 = vmatmul.mubr.msk.f32.gmra.mrb[18].mxu1 %vm415_vm1, %v267_v8  ;;  %v2287_v20 = vadd.f32 %v1720_v18, %v2198_v54  ;;  %v361_v21 = vpop.f32.mrb[7].mxu1 }
  0xeb   :  { %v272_v19 = vadd.f32 %v2198_v54, %v271_v17  ;;  %v2294_v22 = vadd.f32 %v2198_v54, %v361_v21 }
  0xec   :  { %1322 = vst.msk [vmem:[%s2622_s9 + $0x38] sm:$0xff] %vm415_vm1, %v277_v16  ;;  %1340 = vst.msk [vmem:[%s2622_s9 + $0xc8] sm:$0xff] %vm415_vm1, %v2287_v20 }
  0xed   :  { %1321 = vst.msk [vmem:[%s2622_s9 + $0x30] sm:$0xff] %vm415_vm1, %v272_v19  ;;  %v1696_v23 = vpop.f32.mrb[8].mxu0  ;;  %1755 = vmatprep.mubr.msk.f32.mxu1 %vm415_vm1, %v272_v19  ;;  %1339 = vst.msk [vmem:[%s2622_s9 + $0xc0] sm:$0xff] %vm415_vm1, %v2294_v22  ;;  %v1723_v26 = vpop.f32.mrb[8].mxu1 }
  0xee   :  { %v287_v24 = vadd.f32 %v1696_v23, %v2198_v54  ;;  %v281_v25 = vpop.f32.mrb[9].mxu0  ;;  %1756 = vmatmul.mubr.msk.f32.gmra.mrb[20].mxu1 %vm415_vm1, %v277_v16  ;;  %v377_v28 = vadd.f32 %v1723_v26, %v2198_v54  ;;  %v371_v29 = vpop.f32.mrb[9].mxu1 }
  0xef   :  { %v282_v27 = vadd.f32 %v2198_v54, %v281_v25  ;;  %v372_v30 = vadd.f32 %v2198_v54, %v371_v29 }
  0xf0   :  { %1324 = vst.msk [vmem:[%s2622_s9 + $0x48] sm:$0xff] %vm415_vm1, %v287_v24  ;;  %1342 = vst.msk [vmem:[%s2622_s9 + $0xd8] sm:$0xff] %vm415_vm1, %v377_v28 }
  0xf1   :  { %1323 = vst.msk [vmem:[%s2622_s9 + $0x40] sm:$0xff] %vm415_vm1, %v282_v27  ;;  %v1699_v31 = vpop.f32.mrb[10].mxu0  ;;  %1758 = vmatprep.mubr.msk.f32.mxu1 %vm415_vm1, %v282_v27  ;;  %1341 = vst.msk [vmem:[%s2622_s9 + $0xd0] sm:$0xff] %vm415_vm1, %v372_v30  ;;  %v1726_v34 = vpop.f32.mrb[10].mxu1 }
  0xf2   :  { %v297_v32 = vadd.f32 %v1699_v31, %v2198_v54  ;;  %v291_v33 = vpop.f32.mrb[11].mxu0  ;;  %1759 = vmatmul.mubr.msk.f32.gmra.mrb[22].mxu1 %vm415_vm1, %v287_v24  ;;  %v387_v36 = vadd.f32 %v1726_v34, %v2198_v54  ;;  %v381_v37 = vpop.f32.mrb[11].mxu1 }
  0xf3   :  { %v292_v35 = vadd.f32 %v2198_v54, %v291_v33  ;;  %v382_v38 = vadd.f32 %v2198_v54, %v381_v37 }
  0xf4   :  { %1326 = vst.msk [vmem:[%s2622_s9 + $0x58] sm:$0xff] %vm415_vm1, %v297_v32  ;;  %1344 = vst.msk [vmem:[%s2622_s9 + $0xe8] sm:$0xff] %vm415_vm1, %v387_v36 }
  0xf5   :  { %1325 = vst.msk [vmem:[%s2622_s9 + $0x50] sm:$0xff] %vm415_vm1, %v292_v35  ;;  %v1702_v39 = vpop.f32.mrb[12].mxu0  ;;  %1761 = vmatprep.mubr.msk.f32.mxu1 %vm415_vm1, %v292_v35  ;;  %1343 = vst.msk [vmem:[%s2622_s9 + $0xe0] sm:$0xff] %vm415_vm1, %v382_v38  ;;  %v1729_v42 = vpop.f32.mrb[12].mxu1 }
  0xf6   :  { %v307_v40 = vadd.f32 %v1702_v39, %v2198_v54  ;;  %v301_v41 = vpop.f32.mrb[13].mxu0  ;;  %1762 = vmatmul.mubr.msk.f32.gmra.mrb[24].mxu1 %vm415_vm1, %v297_v32  ;;  %v397_v44 = vadd.f32 %v1729_v42, %v2198_v54  ;;  %v391_v45 = vpop.f32.mrb[13].mxu1 }
  0xf7   :  { %v302_v43 = vadd.f32 %v2198_v54, %v301_v41  ;;  %v392_v46 = vadd.f32 %v2198_v54, %v391_v45 }
  0xf8   :  { %1328 = vst.msk [vmem:[%s2622_s9 + $0x68] sm:$0xff] %vm415_vm1, %v307_v40  ;;  %1346 = vst.msk [vmem:[%s2622_s9 + $0xf8] sm:$0xff] %vm415_vm1, %v397_v44 }
  0xf9   :  { %1327 = vst.msk [vmem:[%s2622_s9 + $0x60] sm:$0xff] %vm415_vm1, %v302_v43  ;;  %v1705_v47 = vpop.f32.mrb[14].mxu0  ;;  %1764 = vmatprep.mubr.msk.f32.mxu1 %vm415_vm1, %v302_v43  ;;  %1345 = vst.msk [vmem:[%s2622_s9 + $0xf0] sm:$0xff] %vm415_vm1, %v392_v46 }
  0xfa   :  { %v317_v48 = vadd.f32 %v1705_v47, %v2198_v54  ;;  %v311_v49 = vpop.f32.mrb[15].mxu0  ;;  %1765 = vmatmul.mubr.msk.f32.gmra.mrb[26].mxu1 %vm415_vm1, %v307_v40 }
  0xfb   :  { %v312_v50 = vadd.f32 %v2198_v54, %v311_v49 }
  0xfc   :  { %1330 = vst.msk [vmem:[%s2622_s9 + $0x78] sm:$0xff] %vm415_vm1, %v317_v48 }
  0xfd   :  { %1329 = vst.msk [vmem:[%s2622_s9 + $0x70] sm:$0xff] %vm415_vm1, %v312_v50  ;;  %v1708_v51 = vpop.f32.mrb[16].mxu0  ;;  %1767 = vmatprep.mubr.msk.f32.mxu1 %vm415_vm1, %v312_v50 }
  0xfe   :  { %v327_v52 = vadd.f32 %v1708_v51, %v2198_v54  ;;  %v321_v53 = vpop.f32.mrb[17].mxu0  ;;  %1768 = vmatmul.mubr.msk.f32.gmra.mrb[28].mxu1 %vm415_vm1, %v317_v48 }
  0xff   :  { %v322_v55 = vadd.f32 %v2198_v54, %v321_v53  ;;  %v2427_v54 = vld [vmem:[%s2617_s4] ss:$0 sm:$0xff] }
 0x100   :  { %1332 = vst.msk [vmem:[%s2622_s9 + $0x88] sm:$0xff] %vm415_vm1, %v327_v52 }
 0x101   :  { %1331 = vst.msk [vmem:[%s2622_s9 + $0x80] sm:$0xff] %vm415_vm1, %v322_v55  ;;  %1770 = vmatprep.mubr.msk.f32.mxu1 %vm415_vm1, %v322_v55 }
 0x102   :  { %1771 = vmatmul.mubr.msk.f32.gmra.mrb[30].mxu1 %vm415_vm1, %v327_v52 }
 0x103   :  { %1773 = vmatprep.mubr.msk.f32.mxu1 %vm415_vm1, %v2210_v62 }
 0x106   :  { %1774 = vmatmul.mubr.msk.f32.gmra.mrb[32].mxu1 %vm415_vm1, %v2203_v60 }
 0x107   :  { %1776 = vmatprep.mubr.msk.f32.mxu1 %vm415_vm1, %v2238_v6 }
 0x10a   :  { %1777 = vmatmul.mubr.msk.f32.gmra.mrb[34].mxu1 %vm415_vm1, %v2231_v4 }
 0x10b   :  { %1779 = vmatprep.mubr.msk.f32.mxu1 %vm415_vm1, %v2266_v14 }
 0x10e   :  { %1780 = vmatmul.mubr.msk.f32.gmra.mrb[36].mxu1 %vm415_vm1, %v2259_v12 }
 0x10f   :  { %1782 = vmatprep.mubr.msk.f32.mxu1 %vm415_vm1, %v2294_v22 }
 0x112   :  { %1783 = vmatmul.mubr.msk.f32.gmra.mrb[38].mxu1 %vm415_vm1, %v2287_v20 }
 0x113   :  { %1785 = vmatprep.mubr.msk.f32.mxu1 %vm415_vm1, %v372_v30 }
 0x116   :  { %1786 = vmatmul.mubr.msk.f32.gmra.mrb[40].mxu1 %vm415_vm1, %v377_v28 }
 0x117   :  { %1788 = vmatprep.mubr.msk.f32.mxu1 %vm415_vm1, %v382_v38 }
 0x11a   :  { %1789 = vmatmul.mubr.msk.f32.gmra.mrb[42].mxu1 %vm415_vm1, %v387_v36 }
 0x11b   :  { %1791 = vmatprep.mubr.msk.f32.mxu1 %vm415_vm1, %v392_v46 }
 0x11e   :  { %1792 = vmatmul.mubr.msk.f32.gmra.mrb[44].mxu1 %vm415_vm1, %v397_v44 }
 0x1b5   :  { %v1748_v56 = vpop.f32.mrb[14].mxu1 }
 0x1b6   :  { %v584_v57 = vadd.f32 %v1748_v56, %v2427_v54  ;;  %v578_v58 = vpop.f32.mrb[15].mxu1 }
 0x1b7   :  { %v579_v59 = vadd.f32 %v2427_v54, %v578_v58 }
 0x1b8   :  { %v738_v62 = vmax.f32 %v584_v57, 0.0 }
 0x1b9   :  { %v737_v60 = vmax.f32 %v579_v59, 0.0  ;;  %v1751_v61 = vpop.f32.mrb[16].mxu1 }
 0x1ba   :  { %v594_v63 = vadd.f32 %v1751_v61, %v2427_v54  ;;  %v588_v0 = vpop.f32.mrb[17].mxu1 }
 0x1bb   :  { %v589_v1 = vadd.f32 %v2427_v54, %v588_v0  ;;  %1802 = vmatprep.mubr.msk.f32.mxu0 %vm780_vm2, %v737_v60 }
 0x1bc   :  { %1803 = vmatmul.mubr.msk.f32.vlgmr.msra.gmra.mrb[18].mxu0 %vm780_vm2, %v738_v62  ;;  %v740_v4 = vmax.f32 %v594_v63, 0.0 }
 0x1bd   :  { %v739_v2 = vmax.f32 %v589_v1, 0.0  ;;  %v1754_v3 = vpop.f32.mrb[18].mxu1 }
 0x1be   :  { %v604_v5 = vadd.f32 %v1754_v3, %v2427_v54  ;;  %v598_v6 = vpop.f32.mrb[19].mxu1 }
 0x1bf   :  { %v599_v7 = vadd.f32 %v2427_v54, %v598_v6  ;;  %1805 = vmatprep.mubr.msk.f32.mxu0 %vm780_vm2, %v739_v2 }
 0x1c0   :  { %1806 = vmatmul.mubr.msk.f32.gmra.mrb[20].mxu0 %vm780_vm2, %v740_v4  ;;  %v742_v10 = vmax.f32 %v604_v5, 0.0 }
 0x1c1   :  { %v741_v8 = vmax.f32 %v599_v7, 0.0  ;;  %v1757_v9 = vpop.f32.mrb[20].mxu1 }
 0x1c2   :  { %v614_v11 = vadd.f32 %v1757_v9, %v2427_v54  ;;  %v608_v12 = vpop.f32.mrb[21].mxu1 }
 0x1c3   :  { %v609_v13 = vadd.f32 %v2427_v54, %v608_v12  ;;  %1808 = vmatprep.mubr.msk.f32.mxu0 %vm780_vm2, %v741_v8 }
 0x1c4   :  { %1809 = vmatmul.mubr.msk.f32.gmra.mrb[22].mxu0 %vm780_vm2, %v742_v10  ;;  %v744_v16 = vmax.f32 %v614_v11, 0.0 }
 0x1c5   :  { %v743_v14 = vmax.f32 %v609_v13, 0.0  ;;  %v1760_v15 = vpop.f32.mrb[22].mxu1 }
 0x1c6   :  { %v624_v17 = vadd.f32 %v1760_v15, %v2427_v54  ;;  %v618_v18 = vpop.f32.mrb[23].mxu1 }
 0x1c7   :  { %v619_v19 = vadd.f32 %v2427_v54, %v618_v18  ;;  %1811 = vmatprep.mubr.msk.f32.mxu0 %vm780_vm2, %v743_v14 }
 0x1c8   :  { %1812 = vmatmul.mubr.msk.f32.gmra.mrb[24].mxu0 %vm780_vm2, %v744_v16  ;;  %v746_v22 = vmax.f32 %v624_v17, 0.0 }
 0x1c9   :  { %v745_v20 = vmax.f32 %v619_v19, 0.0  ;;  %v1763_v21 = vpop.f32.mrb[24].mxu1 }
 0x1ca   :  { %v634_v23 = vadd.f32 %v1763_v21, %v2427_v54  ;;  %v628_v24 = vpop.f32.mrb[25].mxu1 }
 0x1cb   :  { %v629_v25 = vadd.f32 %v2427_v54, %v628_v24  ;;  %1814 = vmatprep.mubr.msk.f32.mxu0 %vm780_vm2, %v745_v20 }
 0x1cc   :  { %1815 = vmatmul.mubr.msk.f32.gmra.mrb[26].mxu0 %vm780_vm2, %v746_v22  ;;  %v748_v28 = vmax.f32 %v634_v23, 0.0 }
 0x1cd   :  { %v747_v26 = vmax.f32 %v629_v25, 0.0  ;;  %v1766_v27 = vpop.f32.mrb[26].mxu1  ;;  %v2496_v25 = vld [vmem:[%s2620_s7] sm:$0x1] }
 0x1ce   :  { %v644_v29 = vadd.f32 %v1766_v27, %v2427_v54  ;;  %v638_v30 = vpop.f32.mrb[27].mxu1  ;;  %1676 = vmatprep.mubr.msk.f32.mxu1 %vm780_vm2, %v2496_v25  ;;  %v1964_v27 = vmov 0  }
 0x1cf   :  { %v639_v31 = vadd.f32 %v2427_v54, %v638_v30  ;;  %1817 = vmatprep.mubr.msk.f32.mxu0 %vm780_vm2, %v747_v26  ;;  %v1135_v26 = vld [vmem:[#allocation2] sm:$0x1]  ;;  %1931 = vset.pattern.permute.xlu0 %v1964_v27 }
 0x1d0   :  { %1818 = vmatmul.mubr.msk.f32.gmra.mrb[28].mxu0 %vm780_vm2, %v748_v28  ;;  %v750_v34 = vmax.f32 %v644_v29, 0.0  ;;  %1138 = vperm.xlu0 %1931, %v1135_v26  }
 0x1d1   :  { %v749_v32 = vmax.f32 %v639_v31, 0.0  ;;  %v1769_v33 = vpop.f32.mrb[28].mxu1 }
 0x1d2   :  { %v654_v35 = vadd.f32 %v1769_v33, %v2427_v54  ;;  %v648_v36 = vpop.f32.mrb[29].mxu1 }
 0x1d3   :  { %v649_v37 = vadd.f32 %v2427_v54, %v648_v36  ;;  %1820 = vmatprep.mubr.msk.f32.mxu0 %vm780_vm2, %v749_v32 }
 0x1d4   :  { %1821 = vmatmul.mubr.msk.f32.gmra.mrb[30].mxu0 %vm780_vm2, %v750_v34  ;;  %v752_v40 = vmax.f32 %v654_v35, 0.0 }
 0x1d5   :  { %v751_v38 = vmax.f32 %v649_v37, 0.0  ;;  %v1772_v39 = vpop.f32.mrb[30].mxu1 }
 0x1d6   :  { %v664_v41 = vadd.f32 %v1772_v39, %v2427_v54  ;;  %v658_v42 = vpop.f32.mrb[31].mxu1 }
 0x1d7   :  { %v659_v43 = vadd.f32 %v2427_v54, %v658_v42  ;;  %1823 = vmatprep.mubr.msk.f32.mxu0 %vm780_vm2, %v751_v38 }
 0x1d8   :  { %1824 = vmatmul.mubr.msk.f32.gmra.mrb[32].mxu0 %vm780_vm2, %v752_v40  ;;  %v754_v46 = vmax.f32 %v664_v41, 0.0 }
 0x1d9   :  { %v753_v44 = vmax.f32 %v659_v43, 0.0  ;;  %v1775_v45 = vpop.f32.mrb[32].mxu1 }
 0x1da   :  { %v674_v47 = vadd.f32 %v1775_v45, %v2427_v54  ;;  %v668_v48 = vpop.f32.mrb[33].mxu1 }
 0x1db   :  { %v669_v49 = vadd.f32 %v2427_v54, %v668_v48  ;;  %1826 = vmatprep.mubr.msk.f32.mxu0 %vm780_vm2, %v753_v44 }
 0x1dc   :  { %v756_v50 = vmax.f32 %v674_v47, 0.0  ;;  %1827 = vmatmul.mubr.msk.f32.gmra.mrb[34].mxu0 %vm780_vm2, %v754_v46 }
 0x1dd   :  { %v755_v51 = vmax.f32 %v669_v49, 0.0  ;;  %v1778_v52 = vpop.f32.mrb[34].mxu1 }
 0x1de   :  { %v684_v53 = vadd.f32 %v1778_v52, %v2427_v54  ;;  %v678_v55 = vpop.f32.mrb[35].mxu1 }
 0x1df   :  { %1829 = vmatprep.mubr.msk.f32.mxu0 %vm780_vm2, %v755_v51  ;;  %v679_v56 = vadd.f32 %v2427_v54, %v678_v55 }
 0x1e0   :  { %v758_v57 = vmax.f32 %v684_v53, 0.0  ;;  %1830 = vmatmul.mubr.msk.f32.gmra.mrb[36].mxu0 %vm780_vm2, %v756_v50 }
 0x1e1   :  { %v757_v58 = vmax.f32 %v679_v56, 0.0  ;;  %v1781_v59 = vpop.f32.mrb[36].mxu1 }
 0x1e2   :  { %v694_v60 = vadd.f32 %v1781_v59, %v2427_v54  ;;  %v688_v61 = vpop.f32.mrb[37].mxu1 }
 0x1e3   :  { %1832 = vmatprep.mubr.msk.f32.mxu0 %vm780_vm2, %v757_v58  ;;  %v689_v62 = vadd.f32 %v2427_v54, %v688_v61 }
 0x1e4   :  { %1833 = vmatmul.mubr.msk.f32.gmra.mrb[38].mxu0 %vm780_vm2, %v758_v57  ;;  %v760_v63 = vmax.f32 %v694_v60, 0.0 }
 0x1e5   :  { %v759_v0 = vmax.f32 %v689_v62, 0.0  ;;  %v1784_v1 = vpop.f32.mrb[38].mxu1 }
 0x1e6   :  { %v704_v2 = vadd.f32 %v1784_v1, %v2427_v54  ;;  %v698_v3 = vpop.f32.mrb[39].mxu1 }
 0x1e7   :  { %1835 = vmatprep.mubr.msk.f32.mxu0 %vm780_vm2, %v759_v0  ;;  %v699_v4 = vadd.f32 %v2427_v54, %v698_v3 }
 0x1e8   :  { %1836 = vmatmul.mubr.msk.f32.gmra.mrb[40].mxu0 %vm780_vm2, %v760_v63  ;;  %v762_v5 = vmax.f32 %v704_v2, 0.0 }
 0x1e9   :  { %v761_v6 = vmax.f32 %v699_v4, 0.0  ;;  %v1787_v7 = vpop.f32.mrb[40].mxu1 }
 0x1ea   :  { %v714_v8 = vadd.f32 %v1787_v7, %v2427_v54  ;;  %v708_v9 = vpop.f32.mrb[41].mxu1 }
 0x1eb   :  { %1838 = vmatprep.mubr.msk.f32.mxu0 %vm780_vm2, %v761_v6  ;;  %v709_v10 = vadd.f32 %v2427_v54, %v708_v9 }
 0x1ec   :  { %1839 = vmatmul.mubr.msk.f32.gmra.mrb[42].mxu0 %vm780_vm2, %v762_v5  ;;  %v764_v11 = vmax.f32 %v714_v8, 0.0 }
 0x1ed   :  { %v763_v12 = vmax.f32 %v709_v10, 0.0  ;;  %v1790_v13 = vpop.f32.mrb[42].mxu1 }
 0x1ee   :  { %v724_v14 = vadd.f32 %v1790_v13, %v2427_v54  ;;  %v718_v15 = vpop.f32.mrb[43].mxu1 }
 0x1ef   :  { %1841 = vmatprep.mubr.msk.f32.mxu0 %vm780_vm2, %v763_v12  ;;  %v719_v16 = vadd.f32 %v2427_v54, %v718_v15 }
 0x1f0   :  { %1842 = vmatmul.mubr.msk.f32.gmra.mrb[44].mxu0 %vm780_vm2, %v764_v11  ;;  %v766_v17 = vmax.f32 %v724_v14, 0.0 }
 0x1f1   :  { %v765_v18 = vmax.f32 %v719_v16, 0.0  ;;  %v1793_v19 = vpop.f32.mrb[44].mxu1 }
 0x1f2   :  { %v734_v20 = vadd.f32 %v1793_v19, %v2427_v54  ;;  %v728_v21 = vpop.f32.mrb[45].mxu1 }
 0x1f3   :  { %1844 = vmatprep.mubr.msk.f32.mxu0 %vm780_vm2, %v765_v18  ;;  %v729_v22 = vadd.f32 %v2427_v54, %v728_v21  ;;  %v2503_v54 = vld [vmem:[%s2619_s6] ss:$0 sm:$0xff]  ;;  %s1966_s6 = smov [#allocation3]  }
 0x1f4   :  { %1845 = vmatmul.mubr.msk.f32.gmra.mrb[46].mxu0 %vm780_vm2, %v766_v17  ;;  %v768_v23 = vmax.f32 %v734_v20, 0.0  ;;  %s1390_s7 = sshll.u32 %s1966_s6, 4  ;;  %s1391_s7 = int_to_ptr.vmem [resolvable:$true] %s1390_s7 }
 0x1f5   :  { %v767_v24 = vmax.f32 %v729_v22, 0.0  ;;  %s1940_s30 = scalar_lea.vmem %s1391_s7, 32  ;;  %p1945_p1 = scmp.lt.s32.totalorder %s1391_s7, %s1391_s7 }
 0x1f6   :  { %p1941_p0 = scmp.ne.s32.totalorder %s1391_s7, %s1940_s30  ;;  %p1946_p2 = scmp.lt.s32.totalorder %s1940_s30, %s1940_s30 }
 0x1f7   :  { %1847 = vmatprep.mubr.msk.f32.mxu0 %vm780_vm2, %v767_v24 }
 0x1f8   :  { %1848 = vmatmul.mubr.msk.f32.gmra.mrb[48].mxu0 %vm780_vm2, %v768_v23  ;;  %p1947_p3 = por %p1946_p2, %p1945_p1 }
 0x1fa   :  { %p1948_p4 = pnand %p1947_p3, %p1941_p0 }
 0x28f   :  { %v1804_v28 = vpop.f32.mrb[18].mxu0 }
 0x290   :  { %v949_v29 = vadd.f32 %v1804_v28, %v2503_v54  ;;  %v943_v30 = vpop.f32.mrb[19].mxu0 }
 0x291   :  { %v944_v31 = vadd.f32 %v2503_v54, %v943_v30 }
 0x292   :  { %v1103_v32 = vmax.f32 %v949_v29, 0.0 }
 0x293   :  { %v1102_v33 = vmax.f32 %v944_v31, 0.0  ;;  %v1807_v34 = vpop.f32.mrb[20].mxu0 }
 0x294   :  { %v959_v35 = vadd.f32 %v1807_v34, %v2503_v54  ;;  %v953_v36 = vpop.f32.mrb[21].mxu0 }
 0x295   :  { %v2508_v37 = vpack.c.bf16 %v1103_v32, %v1102_v33  ;;  %v954_v38 = vadd.f32 %v2503_v54, %v953_v36 }
 0x296   :  { %v1105_v39 = vmax.f32 %v959_v35, 0.0 }
 0x297   :  { %v1104_v40 = vmax.f32 %v954_v38, 0.0  ;;  %v1810_v41 = vpop.f32.mrb[22].mxu0 }
 0x298   :  { %v969_v42 = vadd.f32 %v1810_v41, %v2503_v54  ;;  %v963_v43 = vpop.f32.mrb[23].mxu0 }
 0x299   :  { %v2512_v44 = vpack.c.bf16 %v1105_v39, %v1104_v40  ;;  %v964_v45 = vadd.f32 %v2503_v54, %v963_v43 }
 0x29a   :  { %v1107_v46 = vmax.f32 %v969_v42, 0.0 }
 0x29b   :  { %v1106_v47 = vmax.f32 %v964_v45, 0.0  ;;  %v1813_v48 = vpop.f32.mrb[24].mxu0 }
 0x29c   :  { %v979_v49 = vadd.f32 %v1813_v48, %v2503_v54  ;;  %v973_v50 = vpop.f32.mrb[25].mxu0 }
 0x29d   :  { %v2516_v51 = vpack.c.bf16 %v1107_v46, %v1106_v47  ;;  %v974_v52 = vadd.f32 %v2503_v54, %v973_v50 }
 0x29e   :  { %v1109_v53 = vmax.f32 %v979_v49, 0.0 }
 0x29f   :  { %v1108_v55 = vmax.f32 %v974_v52, 0.0  ;;  %v1816_v56 = vpop.f32.mrb[26].mxu0 }
 0x2a0   :  { %v989_v57 = vadd.f32 %v1816_v56, %v2503_v54  ;;  %v983_v58 = vpop.f32.mrb[27].mxu0 }
 0x2a1   :  { %v2520_v59 = vpack.c.bf16 %v1109_v53, %v1108_v55  ;;  %v984_v60 = vadd.f32 %v2503_v54, %v983_v58 }
 0x2a2   :  { %v1111_v61 = vmax.f32 %v989_v57, 0.0 }
 0x2a3   :  { %v1110_v62 = vmax.f32 %v984_v60, 0.0  ;;  %v1819_v63 = vpop.f32.mrb[28].mxu0 }
 0x2a4   :  { %v999_v0 = vadd.f32 %v1819_v63, %v2503_v54  ;;  %v993_v1 = vpop.f32.mrb[29].mxu0 }
 0x2a5   :  { %v2524_v2 = vpack.c.bf16 %v1111_v61, %v1110_v62  ;;  %v994_v3 = vadd.f32 %v2503_v54, %v993_v1 }
 0x2a6   :  { %v1113_v4 = vmax.f32 %v999_v0, 0.0 }
 0x2a7   :  { %v1112_v5 = vmax.f32 %v994_v3, 0.0  ;;  %v1822_v6 = vpop.f32.mrb[30].mxu0 }
 0x2a8   :  { %v1009_v7 = vadd.f32 %v1822_v6, %v2503_v54  ;;  %v1003_v8 = vpop.f32.mrb[31].mxu0 }
 0x2a9   :  { %v2528_v9 = vpack.c.bf16 %v1113_v4, %v1112_v5  ;;  %v1004_v10 = vadd.f32 %v2503_v54, %v1003_v8 }
 0x2aa   :  { %v1115_v11 = vmax.f32 %v1009_v7, 0.0 }
 0x2ab   :  { %v1114_v12 = vmax.f32 %v1004_v10, 0.0  ;;  %v1825_v13 = vpop.f32.mrb[32].mxu0 }
 0x2ac   :  { %v1019_v14 = vadd.f32 %v1825_v13, %v2503_v54  ;;  %v1013_v15 = vpop.f32.mrb[33].mxu0 }
 0x2ad   :  { %v2532_v16 = vpack.c.bf16 %v1115_v11, %v1114_v12  ;;  %v1014_v17 = vadd.f32 %v2503_v54, %v1013_v15 }
 0x2ae   :  { %v1117_v18 = vmax.f32 %v1019_v14, 0.0 }
 0x2af   :  { %v1116_v19 = vmax.f32 %v1014_v17, 0.0  ;;  %v1828_v20 = vpop.f32.mrb[34].mxu0 }
 0x2b0   :  { %v1029_v21 = vadd.f32 %v1828_v20, %v2503_v54  ;;  %v1023_v22 = vpop.f32.mrb[35].mxu0 }
 0x2b1   :  { %v2536_v23 = vpack.c.bf16 %v1117_v18, %v1116_v19  ;;  %v1024_v24 = vadd.f32 %v2503_v54, %v1023_v22 }
 0x2b2   :  { %v1119_v26 = vmax.f32 %v1029_v21, 0.0 }
 0x2b3   :  { %v1118_v27 = vmax.f32 %v1024_v24, 0.0  ;;  %v1831_v28 = vpop.f32.mrb[36].mxu0 }
 0x2b4   :  { %v1039_v29 = vadd.f32 %v1831_v28, %v2503_v54  ;;  %v1033_v30 = vpop.f32.mrb[37].mxu0 }
 0x2b5   :  { %v1878_v32 = vpack.c.bf16 %v1119_v26, %v1118_v27  ;;  %v1034_v33 = vadd.f32 %v2503_v54, %v1033_v30 }
 0x2b6   :  { %v1121_v34 = vmax.f32 %v1039_v29, 0.0 }
 0x2b7   :  { %v1120_v35 = vmax.f32 %v1034_v33, 0.0  ;;  %1880 = vmatprep.subr.msk.bf16.mxu1 %vm2542_vm3, %v1878_v32  ;;  %v1834_v36 = vpop.f32.mrb[38].mxu0 }
 0x2b8   :  { %1883 = vmatpush3.bf16.xpose.msk.msra.mxu1 %vm2542_vm3, %v2508_v37  ;;  %v1049_v38 = vadd.f32 %v1834_v36, %v2503_v54  ;;  %v1043_v39 = vpop.f32.mrb[39].mxu0 }
 0x2b9   :  { %v1884_v40 = vpack.c.bf16 %v1121_v34, %v1120_v35  ;;  %v1044_v41 = vadd.f32 %v2503_v54, %v1043_v39 }
 0x2ba   :  { %v1123_v42 = vmax.f32 %v1049_v38, 0.0 }
 0x2bb   :  { %v1122_v43 = vmax.f32 %v1044_v41, 0.0  ;;  %1886 = vmatprep.subr.msk.bf16.mxu1 %vm2542_vm3, %v1884_v40  ;;  %v1837_v45 = vpop.f32.mrb[40].mxu0 }
 0x2bc   :  { %v1059_v46 = vadd.f32 %v1837_v45, %v2503_v54  ;;  %v1053_v47 = vpop.f32.mrb[41].mxu0 }
 0x2bd   :  { %v1890_v48 = vpack.c.bf16 %v1123_v42, %v1122_v43  ;;  %v1054_v49 = vadd.f32 %v2503_v54, %v1053_v47 }
 0x2be   :  { %v1125_v50 = vmax.f32 %v1059_v46, 0.0 }
 0x2bf   :  { %v1124_v37 = vmax.f32 %v1054_v49, 0.0  ;;  %v1840_v52 = vpop.f32.mrb[42].mxu0 }
 0x2c0   :  { %1889 = vmatpush3.bf16.xpose.msk.msra.mxu1 %vm2542_vm3, %v2512_v44  ;;  %v1069_v53 = vadd.f32 %v1840_v52, %v2503_v54  ;;  %v1063_v55 = vpop.f32.mrb[43].mxu0 }
 0x2c1   :  { %1892 = vmatprep.subr.msk.bf16.mxu1 %vm2542_vm3, %v1890_v48  ;;  %v1896_v56 = vpack.c.bf16 %v1125_v50, %v1124_v37  ;;  %v1064_v57 = vadd.f32 %v2503_v54, %v1063_v55 }
 0x2c2   :  { %v1127_v58 = vmax.f32 %v1069_v53, 0.0 }
 0x2c3   :  { %v1126_v60 = vmax.f32 %v1064_v57, 0.0  ;;  %v1843_v61 = vpop.f32.mrb[44].mxu0 }
 0x2c4   :  { %v1079_v62 = vadd.f32 %v1843_v61, %v2503_v54  ;;  %v1073_v63 = vpop.f32.mrb[45].mxu0 }
 0x2c5   :  { %v1902_v0 = vpack.c.bf16 %v1127_v58, %v1126_v60  ;;  %v1074_v1 = vadd.f32 %v2503_v54, %v1073_v63 }
 0x2c6   :  { %v1129_v3 = vmax.f32 %v1079_v62, 0.0 }
 0x2c7   :  { %v1128_v44 = vmax.f32 %v1074_v1, 0.0  ;;  %v1846_v4 = vpop.f32.mrb[46].mxu0 }
 0x2c8   :  { %1895 = vmatpush3.bf16.xpose.msk.msra.mxu1 %vm2542_vm3, %v2516_v51  ;;  %v1089_v5 = vadd.f32 %v1846_v4, %v2503_v54  ;;  %v1083_v6 = vpop.f32.mrb[47].mxu0 }
 0x2c9   :  { %1898 = vmatprep.subr.msk.bf16.mxu1 %vm2542_vm3, %v1896_v56  ;;  %v1908_v7 = vpack.c.bf16 %v1129_v3, %v1128_v44  ;;  %v1084_v8 = vadd.f32 %v2503_v54, %v1083_v6 }
 0x2ca   :  { %v1131_v10 = vmax.f32 %v1089_v5, 0.0 }
 0x2cb   :  { %v1130_v11 = vmax.f32 %v1084_v8, 0.0  ;;  %v1849_v12 = vpop.f32.mrb[48].mxu0 }
 0x2cc   :  { %v1099_v13 = vadd.f32 %v1849_v12, %v2503_v54  ;;  %v1093_v14 = vpop.f32.mrb[49].mxu0 }
 0x2cd   :  { %v1914_v15 = vpack.c.bf16 %v1131_v10, %v1130_v11  ;;  %v1094_v17 = vadd.f32 %v2503_v54, %v1093_v14  ;;  %v1141_v54 = vlaneseq }
 0x2ce   :  { %v1133_v18 = vmax.f32 %v1099_v13, 0.0 }
 0x2cf   :  { %v1132_v51 = vmax.f32 %v1094_v17, 0.0  ;;  %vm1379_vm4 = vcmp.lt.s32.totalorder %v1141_v54, 256 }
 0x2d0   :  { %1901 = vmatpush3.bf16.xpose.msk.msra.mxu1 %vm2542_vm3, %v2520_v59  ;;  %v1142_v59 = vshrl.u32 %v1141_v54, 7 }
 0x2d1   :  { %1904 = vmatprep.subr.msk.bf16.mxu1 %vm2542_vm3, %v1902_v0  ;;  %v1920_v19 = vpack.c.bf16 %v1133_v18, %v1132_v51 }
 0x2d8   :  { %1907 = vmatpush3.bf16.xpose.msk.msra.mxu1 %vm2542_vm3, %v2524_v2  ;;  %v1143_v2 = vsub.s32 0, %v1142_v59 }
 0x2d9   :  { %1910 = vmatprep.subr.msk.bf16.mxu1 %vm2542_vm3, %v1908_v7 }
 0x2e0   :  { %1913 = vmatpush3.bf16.xpose.msk.msra.mxu1 %vm2542_vm3, %v2528_v9  ;;  %v1139_v9 = vpop.permute.xlu0 %1138 }
 0x2e1   :  { %1916 = vmatprep.subr.msk.bf16.mxu1 %vm2542_vm3, %v1914_v15  ;;  %v1144_v20 = vrot.slane %v1139_v9, %v1143_v2 }
 0x2e8   :  { %1919 = vmatpush3.bf16.xpose.msk.msra.mxu1 %vm2542_vm3, %v2532_v16 }
 0x2e9   :  { %1922 = vmatprep.subr.msk.bf16.mxu1 %vm2542_vm3, %v1920_v19 }
 0x2f0   :  { %1925 = vmatpush3.bf16.xpose.msk.msra.mxu1 %vm2542_vm3, %v2536_v23 }
 0x2f7   :  { %1677 = vmatmul.mubr.msk.f32.vlgmr.msra.gmra.mrb[46].mxu1 %vm780_vm2, %v2496_v25  ;;  %v1965_v25 = vmov 1966171168  }
 0x2f8   :  { %v1363_v31 = vunpack.c.l.s4 %v1965_v25 }
 0x2fa   :  { %v1364_v32 = vunpack.c.0.s8 %v1363_v31 }
 0x2fc   :  { %v1367_v34 = vsub.s32 %v1364_v32, %v1142_v59 }
 0x3ca   :  { %v1310_v21 = vpop.f32.mrb[46].mxu1 }
 0x3cb   :  { %v1311_v22 = vadd.f32 %v1310_v21, %v1144_v20  ;;  %v1312_v24 = vpop.f32.mrb[47].mxu1 }
 0x3cc   :  { %v1313_v26 = vadd.f32 %v1312_v24, %v1144_v20 }
 0x3cd   :  { %v1532_v16 = vmul.f32 -1.442695, %v1311_v22 }
 0x3ce   :  { %v1533_v27 = vmul.f32 -1.442695, %v1313_v26 }
 0x3cf   :  { %1932 = vpow2.f32 %v1532_v16 }
 0x3d0   :  { %1934 = vpow2.f32 %v1533_v27 }
 0x3d9   :  { %v1933_v28 = vpop.eup %1932 }
 0x3da   :  { %v1935_v29 = vpop.eup %1934  ;;  %v1353_v30 = vadd.f32 1.0, %v1933_v28 }
 0x3db   :  { %v1354_v23 = vadd.f32 1.0, %v1935_v29 }
 0x3dc   :  { %1936 = vrcp.f32 %v1353_v30 }
 0x3dd   :  { %1938 = vrcp.f32 %v1354_v23 }
 0x3e6   :  { %v1937_v33 = vpop.eup %1936 }
 0x3e7   :  { %v1939_v35 = vpop.eup %1938 }
 0x3e8   :  { %v1361_v36 = vcombine.low %v1937_v33, %v1939_v35 }
 0x3ea   :  { %v1368_v38 = vrot.slane %v1361_v36, %v1367_v34 }
 0x3ec   :  { %v1375_v39 = vrot.slane %v1368_v38, %v1367_v34 }
 0x3ee   :  { %1381 = vst.msk [vmem:[#allocation3] sm:$0x3] %vm1379_vm4, %v1375_v39 }
 0x3ef   :  { %1951 = shalt.err (!%p1948_p4)
}
 0x3f0   :  { %s1952_s12 = scalar_lea.hbm %s2623_s10, 32 }
 0x3f1   :  { %p1953_p5 = scmp.ne.s32.totalorder %s2623_s10, %s1952_s12  ;;  %p1956_p6 = scmp.lt.u32.totalorder %s1952_s12, %s2623_s10 }
 0x3f3   :  { %p1958_p7 = pnand %p1956_p6, %p1953_p5 }
 0x3f5   :  { %1961 = shalt.err (!%p1958_p7)
}
 0x3f6   :  { %1393 = dma.vmem_to_hbm [thread:$0]  %s1391_s7, 32, %s2623_s10, [#allocation4]  }
 0x3f7   :  { %1962 = dma.done.wait [#allocation4], 32  }
 0x3f8   :  { %1963 = vsyncadd [#allocation4], 4294967264 }
 0x3f9   :  { %1399 = vsyncpa [#allocation4], 1 }

</bundles_post_ra>
